<compile_context>
chip_gen: v7x
topology: tpu7x:2x2x1
jax: 0.10.0
libtpu: 0.0.40
codegen_flags: <defaults>
</compile_context>

<pallas_src>
import math
import numpy as np
import jax
import jax.numpy as jnp
from jax import lax
from jax.experimental import pallas as pl
from jax.experimental.pallas import tpu as pltpu

AMINO_ACID = ['A', 'B', 'C', 'D', 'E', 'X']
D_MODEL = 6
D_OUT = 32

CNN_CONFIGS = {
    "cnn1": [(D_MODEL, 32, 2), (32, 64, 2), (64, D_OUT, 1)],
    "cnn2": [(D_MODEL, 32, 2), (32, 64, 2), (64, 32, 2), (32, D_OUT, 1)],
    "cnn3": [(D_MODEL, 32, 3), (32, 64, 2), (64, 32, 1), (32, D_OUT, 1)],
    "cnn4": [(D_MODEL, 32, 3), (32, 64, 1), (64, D_OUT, 1)],
}
CNN_WIDTHS = {"cnn1": [2, 2, 1], "cnn2": [2, 2, 2, 1],
              "cnn3": [3, 2, 1, 1], "cnn4": [3, 1, 1]}
BRANCH_NAME = {0: "cnn1", 1: "cnn2", 2: "cnn3", 3: "cnn4"}
POOL_WIDTHS = {0: [2, 2], 1: [2, 2, 2], 2: [3, 2, 1, 1], 3: [3, 1, 1]}
POOL_SCALES = {0: 4.0, 1: 8.0, 2: 6.0, 3: 1.0}   # *4, *8, *6, *1 as in the PyTorch forward
FS_MAP = {0: 4, 1: 8, 2: 6, 3: 1}


# ----------------------------------------------------------------------------
# Fused Pallas kernel: PE add + Conv1d stack (one im2col matmul per layer,
# batch-stacked) + stacked AvgPool1d as a single banded matmul, with in-kernel
# runtime channel selection (f0 / f1 from SMEM) and a lane-dense [2, B*L_out] output.
# ----------------------------------------------------------------------------
def make_branch_kernel(conv_widths, B, L):
    n_layers = len(conv_widths)

    def kernel(*refs):
        f_ref = refs[0]           # SMEM int32[2]: (f0, f1)
        x_ref = refs[1]           # VMEM [B*L, D]      raw input (pool branch)
        pe_ref = refs[2]          # VMEM [B*L, D]      positional encoding, batch-tiled
        pbig_ref = refs[3]        # VMEM [B*L_out, B*L] block-diag pool matrix (scale folded)
        wb = refs[4:4 + 2 * n_layers]
        out_ref = refs[-1]        # VMEM [2, B*L_out]

        f0 = f_ref[0]
        f1 = f_ref[1]
        nt = (((1,), (1,)), ((), ()))          # contract last dim of both (A @ B^T)

        x = x_ref[...]                          # [B*L, D]

        # ---------------- pool branch: ONE banded-matrix matmul -----------------
        pooled = jnp.dot(pbig_ref[...], x,
                         preferred_element_type=jnp.float32)          # [B*L_out, D]
        oh_f0 = (lax.broadcasted_iota(jnp.int32, (1, pooled.shape[1]), 1) == f0
                 ).astype(jnp.float32)                                # [1, D]
        pool_row = lax.dot_general(oh_f0, pooled, nt,
                                   preferred_element_type=jnp.float32)  # [1, B*L_out]

        # ---------------- conv branch: PE add once, 1 matmul / layer ------------
        h = x + pe_ref[...]                     # [B*L, D]
        # TODO(synk): nn.Dropout(p=0.1) inside PositionalEncoding is treated as
        # eval-mode identity (deterministic forward).
        L_cur = L
        for li, K in enumerate(conv_widths):
            w = wb[2 * li][...]                 # [K*C_in, C_out]
            bias = wb[2 * li + 1][...]          # [1, C_out]
            L_new = L_cur - K + 1
            if K == 1:
                hcat = h
            else:
                rows = []
                for b in range(B):              # batch-stacked im2col (static slices)
                    base = b * L_cur
                    rows.append(jnp.concatenate(
                        [h[base + j: base + j + L_new, :] for j in range(K)], axis=1))
                hcat = rows[0] if B == 1 else jnp.concatenate(rows, axis=0)
            h = jnp.dot(hcat, w, preferred_element_type=jnp.float32) + bias
            if li < n_layers - 1:
                h = jnp.maximum(h, 0.0)         # ReLU between conv layers, not after last
            L_cur = L_new
        # h: [B*L_out, 32]
        oh_f1 = (lax.broadcasted_iota(jnp.int32, (1, h.shape[1]), 1) == f1
                 ).astype(jnp.float32)          # [1, 32]
        conv_row = lax.dot_general(oh_f1, h, nt,
                                   preferred_element_type=jnp.float32)  # [1, B*L_out]

        # ---------------- lane-dense output store -------------------------------
        out_ref[...] = jnp.concatenate([pool_row, conv_row], axis=0)    # [2, B*L_out]

    return kernel


def pool_matrix_np(L, widths, scale):
    """Composition of stride-1 AvgPool1d(k) layers as a banded matrix [L_out, L],
    with the branch's constant rescaling folded in."""
    P = np.eye(L, dtype=np.float64)
    L_cur = L
    for k in widths:
        L_new = L_cur - k + 1
        Pk = np.zeros((L_new, L_cur), np.float64)
        for l in range(L_new):
            Pk[l, l:l + k] = 1.0 / k
        P = Pk @ P
        L_cur = L_new
    return (P * scale).astype(np.float32)


def positional_encoding_np(L, d_model=D_MODEL):
    position = np.arange(L, dtype=np.float32)[:, None]
    div_term = np.exp(np.arange(0, d_model, 2, dtype=np.float32)
                      * (-math.log(10000.0) / d_model))
    div_term_odd = np.exp(np.arange(0, d_model - 1, 2, dtype=np.float32)
                          * (-math.log(10000.0) / d_model))
    pe = np.zeros((L, d_model), np.float32)
    pe[:, 0::2] = np.sin(position * div_term)
    pe[:, 1::2] = np.cos(position * div_term_odd)
    return pe


# One cached, jitted pallas_call per (branch, B, L).  f0/f1 are runtime operands,
# so varying f never recompiles.
_BRANCH_FN_CACHE = {}


def get_branch_fn(branch, B, L):
    key = (branch, B, L)
    if key in _BRANCH_FN_CACHE:
        return _BRANCH_FN_CACHE[key]

    name = BRANCH_NAME[branch]
    conv_widths = CNN_WIDTHS[name]
    pool_widths = POOL_WIDTHS[branch]
    L_out = L - sum(k - 1 for k in conv_widths)
    assert L_out == L - sum(k - 1 for k in pool_widths)
    D = D_MODEL
    N, Nout = B * L, B * L_out

    pe2d = jnp.asarray(np.tile(positional_encoding_np(L, D), (B, 1)))    # [B*L, D]
    P = pool_matrix_np(L, pool_widths, POOL_SCALES[branch])              # [L_out, L]
    pbig_np = np.zeros((Nout, N), np.float32)                            # block-diag over B
    for b in range(B):
        pbig_np[b * L_out:(b + 1) * L_out, b * L:(b + 1) * L] = P
    pbig = jnp.asarray(pbig_np)

    kernel = make_branch_kernel(conv_widths, B, L)
    n_layers = len(conv_widths)
    vmem = pl.BlockSpec(memory_space=pltpu.MemorySpace.VMEM)
    smem = pl.BlockSpec(memory_space=pltpu.MemorySpace.SMEM)
    pcall = pl.pallas_call(
        kernel,
        out_shape=jax.ShapeDtypeStruct((2, Nout), jnp.float32),
        in_specs=[smem] + [vmem] * (3 + 2 * n_layers),
        out_specs=vmem,
    )

    @jax.jit
    def run(f_arr, x, *flat_wb):
        x2d = x.reshape(N, D)                       # free (contiguous) reshape
        return pcall(f_arr, x2d, pe2d, pbig, *flat_wb)

    _BRANCH_FN_CACHE[key] = (run, L_out)
    return _BRANCH_FN_CACHE[key]


# ----------------------------------------------------------------------------
# Parameters
# ----------------------------------------------------------------------------
def conv_layer_params(key, c_in, c_out, k):
    """PyTorch-style uniform init. Weight stored pre-flattened for im2col:
    [K*C_in, C_out] with w_flat[j*C_in + ci, co] = w_torch[co, ci, j]."""
    kw, kb = jax.random.split(key)
    bound = 1.0 / math.sqrt(c_in * k)
    w = jax.random.uniform(kw, (c_out, c_in, k), jnp.float32, -bound, bound)
    b = jax.random.uniform(kb, (c_out,), jnp.float32, -bound, bound)
    w_flat = jnp.transpose(w, (2, 1, 0)).reshape(k * c_in, c_out)
    return w_flat, b.reshape(1, c_out)


def init_params(key):
    params = {}
    for name, cfg in CNN_CONFIGS.items():
        layers = []
        for (c_in, c_out, k) in cfg:
            key, sub = jax.random.split(key)
            layers.append(conv_layer_params(sub, c_in, c_out, k))
        params[name] = layers
    # NOTE: self.nn (Linear head) and self.ln1..4 (LayerNorm) are defined in the
    # PyTorch __init__ but never used in forward(), so they are omitted.
    return params


# ----------------------------------------------------------------------------
# Host-side motif bookkeeping (sequential, data-dependent scalar scatter)
# ----------------------------------------------------------------------------
def make_possible_motifs(classes_np, s_len, fs):
    motifs = []
    sweep = 0
    while sweep + fs <= s_len:
        mo = classes_np[0, sweep:sweep + fs]
        motifs.append(''.join(AMINO_ACID[int(c)] for c in mo))
        sweep += 1
    return motifs


def find_motifs_host(op, Lrep, n_motifs, fs, overall_imp, trace_vis, importance):
    s_len = overall_imp.shape[0]
    local_visit = np.zeros((s_len,), np.float64)
    mo_effect = op * Lrep
    mo_effect = mo_effect[:, 0:n_motifs]
    std = mo_effect.std(ddof=1)                    # torch.std: unbiased (ddof=1)
    if not np.isfinite(std) or std == 0.0:         # guard: single-element / constant case
        std = 1.0
    mo_effect = np.abs((mo_effect - mo_effect.mean()) / std)
    if mo_effect.sum() == 0:
        return overall_imp, trace_vis
    descending_idx = np.argsort(-mo_effect, axis=-1)[0][:10]
    total_motif = len(descending_idx)
    for i, d_idx in enumerate(descending_idx):
        d_idx = int(d_idx)
        for k in range(d_idx, d_idx + fs):
            if k < s_len:
                new_value = importance * (total_motif - i) * (1.0 - local_visit.sum() / s_len)
                overall_imp[k] += new_value
                trace_vis[k] += 1
                if local_visit[k] == 0:
                    local_visit[k] += 1
    return overall_imp, trace_vis


# ----------------------------------------------------------------------------
# Forward pass of `network`
# ----------------------------------------------------------------------------
def network_forward(params, x, classes, seq_len, f,
                    overall_imp_segments, importance, trace_visitation):
    """x: [batch, seq_len, d_model]; f = (pool_channel, conv_channel, branch).

    Only the branch selected by f[2] is computed (the PyTorch module computes all 8
    stacks but consumes only one conv + one pool output)."""
    B, L, _ = x.shape
    branch = int(f[2])
    name = BRANCH_NAME[branch]
    run, L_out = get_branch_fn(branch, B, L)

    f_arr = jnp.asarray([int(f[0]), int(f[1])], dtype=jnp.int32)
    flat = []
    for (w2, b) in params[name]:
        flat += [w2, b]
    res = run(f_arr, x, *flat)                         # [2, B*L_out], single tiny D2H

    fs = FS_MAP[branch]
    classes_np = np.asarray(classes)
    motifs = make_possible_motifs(classes_np, seq_len, fs)
    n_motifs = len(motifs)

    res_np = np.asarray(res, dtype=np.float64)
    op = res_np[0].reshape(B, L_out)                   # pool_k[:, f[0], :]
    Lrep = res_np[1].reshape(B, L_out)                 # out_k.permute(0,2,1)[:, :, f[1]]

    overall = np.asarray(overall_imp_segments, dtype=np.float64).copy()
    trace = np.asarray(trace_visitation, dtype=np.float64).copy()
    overall, trace = find_motifs_host(op, Lrep, n_motifs, fs, overall, trace,
                                      float(importance))
    return jnp.asarray(overall, jnp.float32), jnp.asarray(trace, jnp.float32)


# ----------------------------------------------------------------------------
if __name__ == "__main__":
    key = jax.random.PRNGKey(0)
    k_x, k_cls, k_par = jax.random.split(key, 3)

    B, L = 2, 16
    x = jax.random.normal(k_x, (B, L, D_MODEL), jnp.float32)          # [batch, seq, feat]
    classes = jax.random.randint(k_cls, (1, L), 0, len(AMINO_ACID))   # [N, L]
    params = init_params(k_par)

    overall_imp_segments = jnp.zeros((L,), jnp.float32)
    trace_visitation = jnp.zeros((L,), jnp.float32)
    importance = 0.5

    # First call compiles the branch-1 kernel once; the second call (different f0/f1)
    # reuses the same compiled kernel since f is a runtime SMEM operand.
    overall, trace = network_forward(params, x, classes, L, (2, 7, 1),
                                     overall_imp_segments, importance, trace_visitation)
    overall, trace = network_forward(params, x, classes, L, (4, 19, 1),
                                     overall, importance, trace)
    jax.block_until_ready((overall, trace))
    print("KERNEL_OK")
</pallas_src>

<mosaic_0001>
module attributes {stable_mosaic.version = 11 : i64} {
  func.func @kernel(%arg0: memref<2xi32, #tpu.memory_space<smem>>, %arg1: memref<32x6xf32, #tpu.memory_space<vmem>>, %arg2: memref<32x6xf32, #tpu.memory_space<vmem>>, %arg3: memref<26x32xf32, #tpu.memory_space<vmem>>, %arg4: memref<12x32xf32, #tpu.memory_space<vmem>>, %arg5: memref<1x32xf32, #tpu.memory_space<vmem>>, %arg6: memref<64x64xf32, #tpu.memory_space<vmem>>, %arg7: memref<1x64xf32, #tpu.memory_space<vmem>>, %arg8: memref<128x32xf32, #tpu.memory_space<vmem>>, %arg9: memref<1x32xf32, #tpu.memory_space<vmem>>, %arg10: memref<32x32xf32, #tpu.memory_space<vmem>>, %arg11: memref<1x32xf32, #tpu.memory_space<vmem>>, %arg12: memref<2x26xf32, #tpu.memory_space<vmem>>) attributes {dimension_semantics = [], scalar_prefetch = 0 : i64, scratch_operands = 0 : i64, tpu.core_type = #tpu.core_type<tc>} {
    %c0 = arith.constant 0 : index
    %0 = memref.load %arg0[%c0] : memref<2xi32, #tpu.memory_space<smem>>
    %c1 = arith.constant 1 : index
    %1 = memref.load %arg0[%c1] : memref<2xi32, #tpu.memory_space<smem>>
    %c0_0 = arith.constant 0 : index
    %c0_1 = arith.constant 0 : index
    %2 = vector.load %arg1[%c0_0, %c0_1] : memref<32x6xf32, #tpu.memory_space<vmem>>, vector<32x6xf32>
    %c0_2 = arith.constant 0 : index
    %c0_3 = arith.constant 0 : index
    %3 = vector.load %arg3[%c0_2, %c0_3] : memref<26x32xf32, #tpu.memory_space<vmem>>, vector<26x32xf32>
    %cst = arith.constant dense<0.000000e+00> : vector<26x6xf32>
    %4 = tpu.matmul %3, %2, %cst {dimension_numbers = #tpu.dot_dimension_numbers<[1], [0], [0], [1], [0, 0, 1, 1], [], []>} : vector<26x32xf32>, vector<32x6xf32>, vector<26x6xf32> -> vector<26x6xf32>
    %5 = tpu.iota {dimensions = array<i32: 1>} : vector<1x6xi32>
    %6 = vector.broadcast %0 : i32 to vector<1x6xi32>
    %7 = arith.cmpi eq, %5, %6 : vector<1x6xi32>
    %8 = arith.extui %7 : vector<1x6xi1> to vector<1x6xi32>
    %9 = arith.sitofp %8 : vector<1x6xi32> to vector<1x6xf32>
    %cst_4 = arith.constant dense<0.000000e+00> : vector<1x26xf32>
    %10 = tpu.matmul %9, %4, %cst_4 {dimension_numbers = #tpu.dot_dimension_numbers<[1], [1], [0], [0], [0, 0, 1, 0], [], []>} : vector<1x6xf32>, vector<26x6xf32>, vector<1x26xf32> -> vector<1x26xf32>
    %c0_5 = arith.constant 0 : index
    %c0_6 = arith.constant 0 : index
    %11 = vector.load %arg2[%c0_5, %c0_6] : memref<32x6xf32, #tpu.memory_space<vmem>>, vector<32x6xf32>
    %12 = arith.addf %2, %11 : vector<32x6xf32>
    %c0_7 = arith.constant 0 : index
    %c0_8 = arith.constant 0 : index
    %13 = vector.load %arg4[%c0_7, %c0_8] : memref<12x32xf32, #tpu.memory_space<vmem>>, vector<12x32xf32>
    %c0_9 = arith.constant 0 : index
    %c0_10 = arith.constant 0 : index
    %14 = vector.load %arg5[%c0_9, %c0_10] : memref<1x32xf32, #tpu.memory_space<vmem>>, vector<1x32xf32>
    %15 = vector.extract_strided_slice %12 {offsets = [0, 0], sizes = [15, 6], strides = [1, 1]} : vector<32x6xf32> to vector<15x6xf32>
    %16 = vector.extract_strided_slice %12 {offsets = [1, 0], sizes = [15, 6], strides = [1, 1]} : vector<32x6xf32> to vector<15x6xf32>
    %17 = tpu.concatenate %15, %16 in 1 : vector<15x6xf32>, vector<15x6xf32> -> vector<15x12xf32>
    %18 = vector.extract_strided_slice %12 {offsets = [16, 0], sizes = [15, 6], strides = [1, 1]} : vector<32x6xf32> to vector<15x6xf32>
    %19 = vector.extract_strided_slice %12 {offsets = [17, 0], sizes = [15, 6], strides = [1, 1]} : vector<32x6xf32> to vector<15x6xf32>
    %20 = tpu.concatenate %18, %19 in 1 : vector<15x6xf32>, vector<15x6xf32> -> vector<15x12xf32>
    %21 = tpu.concatenate %17, %20 in 0 : vector<15x12xf32>, vector<15x12xf32> -> vector<30x12xf32>
    %cst_11 = arith.constant dense<0.000000e+00> : vector<30x32xf32>
    %22 = tpu.matmul %21, %13, %cst_11 {dimension_numbers = #tpu.dot_dimension_numbers<[1], [0], [0], [1], [0, 0, 1, 1], [], []>} : vector<30x12xf32>, vector<12x32xf32>, vector<30x32xf32> -> vector<30x32xf32>
    %23 = vector.broadcast %14 : vector<1x32xf32> to vector<30x32xf32>
    %24 = arith.addf %22, %23 : vector<30x32xf32>
    %cst_12 = arith.constant 0.000000e+00 : f32
    %25 = vector.broadcast %cst_12 : f32 to vector<30x32xf32>
    %26 = arith.maximumf %24, %25 : vector<30x32xf32>
    %c0_13 = arith.constant 0 : index
    %c0_14 = arith.constant 0 : index
    %27 = vector.load %arg6[%c0_13, %c0_14] : memref<64x64xf32, #tpu.memory_space<vmem>>, vector<64x64xf32>
    %c0_15 = arith.constant 0 : index
    %c0_16 = arith.constant 0 : index
    %28 = vector.load %arg7[%c0_15, %c0_16] : memref<1x64xf32, #tpu.memory_space<vmem>>, vector<1x64xf32>
    %29 = vector.extract_strided_slice %26 {offsets = [0, 0], sizes = [14, 32], strides = [1, 1]} : vector<30x32xf32> to vector<14x32xf32>
    %30 = vector.extract_strided_slice %26 {offsets = [1, 0], sizes = [14, 32], strides = [1, 1]} : vector<30x32xf32> to vector<14x32xf32>
    %31 = tpu.concatenate %29, %30 in 1 : vector<14x32xf32>, vector<14x32xf32> -> vector<14x64xf32>
    %32 = vector.extract_strided_slice %26 {offsets = [15, 0], sizes = [14, 32], strides = [1, 1]} : vector<30x32xf32> to vector<14x32xf32>
    %33 = vector.extract_strided_slice %26 {offsets = [16, 0], sizes = [14, 32], strides = [1, 1]} : vector<30x32xf32> to vector<14x32xf32>
    %34 = tpu.concatenate %32, %33 in 1 : vector<14x32xf32>, vector<14x32xf32> -> vector<14x64xf32>
    %35 = tpu.concatenate %31, %34 in 0 : vector<14x64xf32>, vector<14x64xf32> -> vector<28x64xf32>
    %cst_17 = arith.constant dense<0.000000e+00> : vector<28x64xf32>
    %36 = tpu.matmul %35, %27, %cst_17 {dimension_numbers = #tpu.dot_dimension_numbers<[1], [0], [0], [1], [0, 0, 1, 1], [], []>} : vector<28x64xf32>, vector<64x64xf32>, vector<28x64xf32> -> vector<28x64xf32>
    %37 = vector.broadcast %28 : vector<1x64xf32> to vector<28x64xf32>
    %38 = arith.addf %36, %37 : vector<28x64xf32>
    %cst_18 = arith.constant 0.000000e+00 : f32
    %39 = vector.broadcast %cst_18 : f32 to vector<28x64xf32>
    %40 = arith.maximumf %38, %39 : vector<28x64xf32>
    %c0_19 = arith.constant 0 : index
    %c0_20 = arith.constant 0 : index
    %41 = vector.load %arg8[%c0_19, %c0_20] : memref<128x32xf32, #tpu.memory_space<vmem>>, vector<128x32xf32>
    %c0_21 = arith.constant 0 : index
    %c0_22 = arith.constant 0 : index
    %42 = vector.load %arg9[%c0_21, %c0_22] : memref<1x32xf32, #tpu.memory_space<vmem>>, vector<1x32xf32>
    %43 = vector.extract_strided_slice %40 {offsets = [0, 0], sizes = [13, 64], strides = [1, 1]} : vector<28x64xf32> to vector<13x64xf32>
    %44 = vector.extract_strided_slice %40 {offsets = [1, 0], sizes = [13, 64], strides = [1, 1]} : vector<28x64xf32> to vector<13x64xf32>
    %45 = tpu.concatenate %43, %44 in 1 : vector<13x64xf32>, vector<13x64xf32> -> vector<13x128xf32>
    %46 = vector.extract_strided_slice %40 {offsets = [14, 0], sizes = [13, 64], strides = [1, 1]} : vector<28x64xf32> to vector<13x64xf32>
    %47 = vector.extract_strided_slice %40 {offsets = [15, 0], sizes = [13, 64], strides = [1, 1]} : vector<28x64xf32> to vector<13x64xf32>
    %48 = tpu.concatenate %46, %47 in 1 : vector<13x64xf32>, vector<13x64xf32> -> vector<13x128xf32>
    %49 = tpu.concatenate %45, %48 in 0 : vector<13x128xf32>, vector<13x128xf32> -> vector<26x128xf32>
    %cst_23 = arith.constant dense<0.000000e+00> : vector<26x32xf32>
    %50 = tpu.matmul %49, %41, %cst_23 {dimension_numbers = #tpu.dot_dimension_numbers<[1], [0], [0], [1], [0, 0, 1, 1], [], []>} : vector<26x128xf32>, vector<128x32xf32>, vector<26x32xf32> -> vector<26x32xf32>
    %51 = vector.broadcast %42 : vector<1x32xf32> to vector<26x32xf32>
    %52 = arith.addf %50, %51 : vector<26x32xf32>
    %cst_24 = arith.constant 0.000000e+00 : f32
    %53 = vector.broadcast %cst_24 : f32 to vector<26x32xf32>
    %54 = arith.maximumf %52, %53 : vector<26x32xf32>
    %c0_25 = arith.constant 0 : index
    %c0_26 = arith.constant 0 : index
    %55 = vector.load %arg10[%c0_25, %c0_26] : memref<32x32xf32, #tpu.memory_space<vmem>>, vector<32x32xf32>
    %c0_27 = arith.constant 0 : index
    %c0_28 = arith.constant 0 : index
    %56 = vector.load %arg11[%c0_27, %c0_28] : memref<1x32xf32, #tpu.memory_space<vmem>>, vector<1x32xf32>
    %cst_29 = arith.constant dense<0.000000e+00> : vector<26x32xf32>
    %57 = tpu.matmul %54, %55, %cst_29 {dimension_numbers = #tpu.dot_dimension_numbers<[1], [0], [0], [1], [0, 0, 1, 1], [], []>} : vector<26x32xf32>, vector<32x32xf32>, vector<26x32xf32> -> vector<26x32xf32>
    %58 = vector.broadcast %56 : vector<1x32xf32> to vector<26x32xf32>
    %59 = arith.addf %57, %58 : vector<26x32xf32>
    %60 = tpu.iota {dimensions = array<i32: 1>} : vector<1x32xi32>
    %61 = vector.broadcast %1 : i32 to vector<1x32xi32>
    %62 = arith.cmpi eq, %60, %61 : vector<1x32xi32>
    %63 = arith.extui %62 : vector<1x32xi1> to vector<1x32xi32>
    %64 = arith.sitofp %63 : vector<1x32xi32> to vector<1x32xf32>
    %cst_30 = arith.constant dense<0.000000e+00> : vector<1x26xf32>
    %65 = tpu.matmul %64, %59, %cst_30 {dimension_numbers = #tpu.dot_dimension_numbers<[1], [1], [0], [0], [0, 0, 1, 0], [], []>} : vector<1x32xf32>, vector<26x32xf32>, vector<1x26xf32> -> vector<1x26xf32>
    %66 = tpu.concatenate %10, %65 in 0 : vector<1x26xf32>, vector<1x26xf32> -> vector<2x26xf32>
    %c0_31 = arith.constant 0 : index
    %c0_32 = arith.constant 0 : index
    %67 = vector.load %arg12[%c0_31, %c0_32] : memref<2x26xf32, #tpu.memory_space<vmem>>, vector<2x26xf32>
    tpu.vector_store %arg12[%c0_31, %c0_32], %66 {strides = array<i32>} : memref<2x26xf32, #tpu.memory_space<vmem>>, vector<2x26xf32>,
    return
  }
}

</mosaic_0001>

<bundles_post_ra>
// kernel: run.1
= control target key start
LH: loop header
LB: loop body
LE: loop exit
PB: predicated region body
PF: predicated region fallthrough
CT: control target
= control target key end

     0   :  { %17 = vsyncpa [#allocation4], 0  ;;  %s1599_s0 = inlined_call_operand.vmem [shape: s32[2], index: 0, kind: input, shape index: {}]   ;;  %s1600_s1 = inlined_call_operand.vmem [shape: f32[32,6], index: 1, kind: input, shape index: {}]   ;;  %s1601_s2 = inlined_call_operand.vmem [shape: f32[32,6], index: 2, kind: input, shape index: {}]   ;;  %s1602_s3 = inlined_call_operand.vmem [shape: f32[26,32], index: 3, kind: input, shape index: {}]   ;;  %s1603_s4 = inlined_call_operand.vmem [shape: f32[12,32], index: 4, kind: input, shape index: {}]   ;;  %s1604_s5 = inlined_call_operand.vmem [shape: f32[1,32], index: 5, kind: input, shape index: {}]   ;;  %s1605_s6 = inlined_call_operand.vmem [shape: f32[64,64], index: 6, kind: input, shape index: {}]   ;;  %s1606_s7 = inlined_call_operand.vmem [shape: f32[1,64], index: 7, kind: input, shape index: {}]   ;;  %s1607_s8 = inlined_call_operand.vmem [shape: f32[128,32], index: 8, kind: input, shape index: {}]   ;;  %s1608_s9 = inlined_call_operand.vmem [shape: f32[1,32], index: 9, kind: input, shape index: {}]   ;;  %s1609_s10 = inlined_call_operand.vmem [shape: f32[32,32], index: 10, kind: input, shape index: {}]   ;;  %s1610_s11 = inlined_call_operand.vmem [shape: f32[1,32], index: 11, kind: input, shape index: {}]   ;;  %s1611_s12 = inlined_call_operand.hbm [shape: f32[2,26], index: 12, kind: output, shape index: {}]  }
   0x1   :  { %18 = vsyncpa [#allocation3], 0  ;;  %s25_s23 = sshll.u32 %s1599_s0, 4  ;;  %s26_s23 = int_to_ptr.vmem [resolvable:$true] %s25_s23 }
   0x2   :  { %s1264_s24 = scalar_lea.vmem %s26_s23, 16  ;;  %p1269_p1 = scmp.lt.s32.totalorder %s26_s23, %s26_s23 }
   0x3   :  { %p1265_p0 = scmp.ne.s32.totalorder %s26_s23, %s1264_s24  ;;  %p1270_p2 = scmp.lt.s32.totalorder %s1264_s24, %s1264_s24 }
   0x5   :  { %p1271_p3 = por %p1270_p2, %p1269_p1 }
   0x7   :  { %p1272_p4 = pnand %p1271_p3, %p1265_p0 }
   0x9   :  { %1275 = shalt.err (!%p1272_p4)
}
   0xa   :  { %s1302_s25 = smov [#allocation2]  }
   0xb   :  { %28 = dma.vmem_to_smem %s26_s23, 16, %s1302_s25, [#allocation4]  }
   0xc   :  { %1298 = dma.done.wait [#allocation4], 16  }
   0xd   :  { %1299 = vsyncadd [#allocation4], 4294967280 }
   0xe   :  { %54 = sfence }
   0xf   :  { %v58_v0 = vld [vmem:[%s1600_s1 + $0x8] sm:$0xff]  ;;  %v59_v2 = vld [vmem:[%s1600_s1 + $0x10] sm:$0xff]  ;;  %vm65_vm0 = vcmask 261120   ;;  %v60_v4 = vld [vmem:[%s1600_s1 + $0x18] sm:$0xff]  ;;  %vm268_vm1 = vcmask 1046528   ;;  %vm317_vm2 = vcmask 1043456  }
  0x10   :  { %v256_v1 = vld [vmem:[%s1601_s2 + $0x8] sm:$0xff]  ;;  %v257_v5 = vld [vmem:[%s1601_s2 + $0x10] sm:$0xff]  ;;  %v258_v6 = vld [vmem:[%s1601_s2 + $0x18] sm:$0xff]  ;;  %v1163_v15 = vpack.c.bf16 %v60_v4, %v59_v2  ;;  %vm1304_vm3 = vmmov 1   ;;  %v1305_v27 = vmov 0.0|0.0   ;;  %vm169_vm5 = vcmask 48128  }
  0x11   :  { %v260_v3 = vadd.f32 %v256_v1, %v58_v0  ;;  %v261_v7 = vadd.f32 %v257_v5, %v59_v2  ;;  %v262_v8 = vadd.f32 %v258_v6, %v60_v4  ;;  %v57_v9 = vld [vmem:[%s1600_s1] sm:$0xff]  ;;  %v264_v19 = vld [vmem:[%s1603_s4 + $0x8] sm:$0xf]  ;;  %vm1176_vm4 = vmpackc.low %vm317_vm2, %vm1304_vm3  ;;  %1167 = vmatprep.subr.bf16.mxu1 %v1305_v27  ;;  %vm306_vm6 = vcmask 97280   ;;  %s1309_s16 = smov 64   ;;  %s941_s26 = sld [smem:[#allocation2 + $0x1]] }
  0x12   :  { %v255_v10 = vld [vmem:[%s1601_s2] sm:$0xff]  ;;  %v1159_v14 = vpack.c.bf16 %v58_v0, %v57_v9  ;;  %s1303_s2 = smov 6   ;;  %v62_v24 = vld [vmem:[%s1602_s3 + $0x8] sm:$0xff]  ;;  %v63_v25 = vld [vmem:[%s1602_s3 + $0x10] sm:$0xff]  ;;  %vm466_vm8 = vcmask 523264   ;;  %vm458_vm9 = vcmask 1045504  }
  0x13   :  { %v61_v11 = vld [vmem:[%s1602_s3] sm:$0xff]  ;;  %v270_v12 = vrot.slane %v260_v3, 1  ;;  %v259_v13 = vadd.f32 %v255_v10, %v57_v9  ;;  %v282_v16 = vrot.slane %v261_v7, 1  ;;  %v283_v17 = vrot.slane %v262_v8, 1  ;;  %v64_v26 = vld [vmem:[%s1602_s3 + $0x18] sm:$0x3]  ;;  %vm1436_vm7 = vmpackc.low %vm169_vm5, %vm169_vm5 }
  0x14   :  { %1047 = vmatprep.mubr.msk.f32.mxu0 %vm65_vm0, %v61_v11  ;;  %v263_v18 = vld [vmem:[%s1603_s4] sm:$0xff]  ;;  %1160 = vmatprep.subr.bf16.mxu0 %v1159_v14  ;;  %v411_v46 = vld [vmem:[%s1605_s6 + $0x8] sm:$0xff]  ;;  %v412_v47 = vld [vmem:[%s1605_s6 + $0x10] sm:$0xff]  ;;  %vm1307_vm10 = vmmov 0   ;;  %vm625_vm12 = vcmask 1044480   ;;  %vm922_vm15 = vcmask 1040384  }
  0x15   :  { %274 = vrot.lane.b32.xlu1 %v270_v12, %s1303_s2  ;;  %v269_v20 = vrot.slane %v259_v13, 1  ;;  %v284_v21 = vsel %vm268_vm1, %v282_v16, %v283_v17  ;;  %1162 = vmatpush3.bf16.msra.mxu0 %v1159_v14  ;;  %v1175_v22 = vpack.c.bf16 %v264_v19, %v263_v18  ;;  %v410_v45 = vld [vmem:[%s1605_s6] sm:$0xff]  ;;  %v413_v50 = vld [vmem:[%s1605_s6 + $0x18] sm:$0xff]  ;;  %v415_v54 = vld [vmem:[%s1605_s6 + $0x28] sm:$0xff] }
  0x16   :  { %285 = vrot.lane.b32.xlu0 %v284_v21, %s1303_s2  ;;  %1164 = vmatprep.subr.bf16.mxu0 %v1163_v15  ;;  %v1181_v49 = vpack.c.bf16 %v411_v46, %v410_v45  ;;  %v1185_v52 = vpack.c.bf16 %v413_v50, %v412_v47  ;;  %v414_v53 = vld [vmem:[%s1605_s6 + $0x20] sm:$0xff]  ;;  %v416_v57 = vld [vmem:[%s1605_s6 + $0x30] sm:$0xff]  ;;  %v417_v58 = vld [vmem:[%s1605_s6 + $0x38] sm:$0xff]  ;;  %s55_s6 = sld [smem:[#allocation2]] }
  0x17   :  { %v271_v23 = vsel %vm268_vm1, %v269_v20, %v270_v12  ;;  %v1189_v55 = vpack.c.bf16 %v415_v54, %v414_v53  ;;  %v952_v56 = vld [vmem:[%s1604_s5] ss:$0 sm:$0xff]  ;;  %v1193_v60 = vpack.c.bf16 %v417_v58, %v416_v57  ;;  %s1306_s5 = smov 32   ;;  %v572_v45 = vld [vmem:[%s1607_s8 + $0x30] sm:$0xff]  ;;  %v573_v46 = vld [vmem:[%s1607_s8 + $0x38] sm:$0xff] }
  0x18   :  { %v570_v42 = vld [vmem:[%s1607_s8 + $0x20] sm:$0xff]  ;;  %v1209_v47 = vpack.c.bf16 %v573_v46, %v572_v45  ;;  %v725_v45 = vld [vmem:[%s1609_s10 + $0x18] sm:$0xff]  ;;  %vm1239_vm13 = vmpackc.low %vm65_vm0, %vm65_vm0 }
  0x19   :  { %287 = vrot.lane.b32.xlu1 %v283_v17, %s1303_s2  ;;  %1166 = vmatpush3.bf16.msra.mxu0 %v1163_v15  ;;  %v958_v54 = vld [vmem:[%s1606_s7] ss:$0 sm:$0xff] }
  0x1a   :  { %272 = vrot.lane.b32.xlu0 %v271_v23, %s1303_s2  ;;  %1177 = vmatprep.subr.msk.bf16.mxu0 %vm1176_vm4, %v1175_v22 }
  0x1c   :  { %1048 = vmatmul.mubr.msk.f32.vlgmr.msra.gmra.mrb[0].mxu0 %vm65_vm0, %v62_v24 }
  0x1d   :  { %1180 = vmatpush3.bf16.msk.msra.mxu0 %vm1176_vm4, %v1175_v22  ;;  %1050 = vmatprep.mubr.msk.f32.mxu0 %vm65_vm0, %v63_v25 }
  0x1e   :  { %1182 = vmatprep.subr.bf16.mxu0 %v1181_v49 }
  0x20   :  { %1051 = vmatmul.mubr.msk.f32.gmra.mrb[2].mxu0 %vm65_vm0, %v64_v26 }
  0x87   :  { %v275_v28 = vpop.permute.xlu1 %274 }
  0x88   :  { %v286_v29 = vpop.permute.xlu0 %285  ;;  %v279_v33 = vsel %vm169_vm5, %v260_v3, %v275_v28 }
  0x89   :  { %v291_v30 = vsel %vm169_vm5, %v261_v7, %v286_v29 }
  0x8a   :  { %v295_v31 = vrot.slane %v291_v30, 1 }
  0x8b   :  { %v288_v32 = vpop.permute.xlu1 %287 }
  0x8c   :  { %v292_v34 = vsel %vm169_vm5, %v262_v8, %v288_v32  ;;  %v273_v36 = vpop.permute.xlu0 %272  ;;  %v299_v38 = vsel %vm268_vm1, %v279_v33, %v295_v31  ;;  %v1308_v32 = vmov 0.0   ;;  %v566_v33 = vld [vmem:[%s1607_s8] sm:$0xff] }
  0x8d   :  { %v296_v35 = vrot.slane %v292_v34, 1  ;;  %v278_v37 = vsel %vm169_vm5, %v259_v13, %v273_v36  ;;  %1061 = vmatprep.mubr.msk.f32.mxu1 %vm1307_vm10, %v1308_v32  ;;  %v567_v34 = vld [vmem:[%s1607_s8 + $0x8] sm:$0xff] }
  0x8e   :  { %1068 = vmatprep.mubr.msk.f32.mxu0 %vm306_vm6, %v278_v37  ;;  %v568_v37 = vld [vmem:[%s1607_s8 + $0x10] sm:$0xff] }
  0x8f   :  { %v297_v39 = vsel %vm268_vm1, %v295_v31, %v296_v35  ;;  %1069 = vmatmul.mubr.msk.f32.vlgmr.msra.gmra.mrb[4].mxu0 %vm306_vm6, %v299_v38  ;;  %v163_v31 = vlaneseq  ;;  %v569_v38 = vld [vmem:[%s1607_s8 + $0x18] sm:$0xff] }
  0x90   :  { %1071 = vmatprep.mubr.msk.f32.mxu0 %vm306_vm6, %v297_v39  ;;  %1184 = vmatpush3.bf16.msra.mxu0 %v1181_v49  ;;  %v165_v39 = vstv %s55_s6  ;;  %v575_v49 = vld [vmem:[%s1607_s8 + $0x48] sm:$0xff] }
  0x91   :  { %1186 = vmatprep.subr.bf16.mxu0 %v1185_v52  ;;  %v1493_v36 = vand.u32 127, %v163_v31 }
  0x93   :  { %1072 = vmatmul.mubr.msk.f32.gmra.mrb[6].mxu0 %vm306_vm6, %v296_v35  ;;  %v1197_v35 = vpack.c.bf16 %v567_v34, %v566_v33  ;;  %vm166_vm11 = vcmp.eq.s32.totalorder %v1493_v36, %v165_v39 }
  0x94   :  { %1188 = vmatpush3.bf16.msra.mxu0 %v1185_v52  ;;  %v577_v52 = vld [vmem:[%s1607_s8 + $0x58] sm:$0xff] }
  0x95   :  { %1190 = vmatprep.subr.bf16.mxu0 %v1189_v55 }
  0x98   :  { %1192 = vmatpush3.bf16.msra.mxu0 %v1189_v55  ;;  %v578_v55 = vld [vmem:[%s1607_s8 + $0x60] sm:$0xff] }
  0x99   :  { %1194 = vmatprep.subr.bf16.mxu0 %v1193_v60 }
  0x9c   :  { %1196 = vmatpush3.bf16.msra.mxu0 %v1193_v60 }
  0xef   :  { %v1049_v40 = vpop.f32.mrb[0].mxu0 }
  0xf0   :  { %v144_v41 = vpop.f32.mrb[1].mxu0 }
  0xf1   :  { %v1168_v43 = vpack.c.bf16 %v1049_v40, %v144_v41  ;;  %v1201_v40 = vpack.c.bf16 %v569_v38, %v568_v37  ;;  %v946_v41 = vsel %vm166_vm11, 1.0, %v1308_v32 }
  0xf3   :  { %1170 = vmatpush3.bf16.xpose.msk.msra.mxu1 %vm1436_vm7, %v1168_v43  ;;  %v1052_v44 = vpop.f32.mrb[2].mxu0  ;;  %v571_v43 = vld [vmem:[%s1607_s8 + $0x28] sm:$0xff] }
  0xf4   :  { %v154_v48 = vpop.f32.mrb[3].mxu0  ;;  %1171 = vmatprep.subr.bf16.mxu1 %v1305_v27 }
  0xf5   :  { %v1172_v51 = vpack.c.bf16 %v1052_v44, %v154_v48  ;;  %v1205_v44 = vpack.c.bf16 %v571_v43, %v570_v42  ;;  %v574_v48 = vld [vmem:[%s1607_s8 + $0x40] sm:$0xff] }
  0xf6   :  { %v1213_v50 = vpack.c.bf16 %v575_v49, %v574_v48 }
  0xfb   :  { %1174 = vmatpush3.bf16.xpose.msk.msra.mxu1 %vm1436_vm7, %v1172_v51  ;;  %v576_v51 = vld [vmem:[%s1607_s8 + $0x50] sm:$0xff] }
  0xfc   :  { %1198 = vmatprep.subr.bf16.mxu1 %v1197_v35  ;;  %v1217_v53 = vpack.c.bf16 %v577_v52, %v576_v51 }
 0x102   :  { %1062 = vmatmul.mubr.msk.f32.vlgmr.msra.gmra.mrb[0].mxu1 %vm169_vm5, %v946_v41 }
 0x103   :  { %1200 = vmatpush3.bf16.msra.mxu1 %v1197_v35 }
 0x104   :  { %1202 = vmatprep.subr.bf16.mxu1 %v1201_v40 }
 0x107   :  { %1204 = vmatpush3.bf16.msra.mxu1 %v1201_v40 }
 0x108   :  { %1206 = vmatprep.subr.bf16.mxu1 %v1205_v44 }
 0x10b   :  { %1208 = vmatpush3.bf16.msra.mxu1 %v1205_v44  ;;  %v724_v44 = vld [vmem:[%s1609_s10 + $0x10] sm:$0xff] }
 0x10c   :  { %1210 = vmatprep.subr.bf16.mxu1 %v1209_v47  ;;  %v1233_v46 = vpack.c.bf16 %v725_v45, %v724_v44 }
 0x10f   :  { %1212 = vmatpush3.bf16.msra.mxu1 %v1209_v47  ;;  %v963_v47 = vld [vmem:[%s1608_s9] ss:$0 sm:$0xff] }
 0x110   :  { %1214 = vmatprep.subr.bf16.mxu1 %v1213_v50 }
 0x113   :  { %1216 = vmatpush3.bf16.msra.mxu1 %v1213_v50 }
 0x114   :  { %1218 = vmatprep.subr.bf16.mxu1 %v1217_v53 }
 0x117   :  { %1220 = vmatpush3.bf16.msra.mxu1 %v1217_v53 }
 0x162   :  { %v1070_v59 = vpop.f32.mrb[4].mxu0 }
 0x163   :  { %v393_v61 = vadd.f32 %v1070_v59, %v952_v56  ;;  %v387_v62 = vpop.f32.mrb[5].mxu0 }
 0x164   :  { %v388_v63 = vadd.f32 %v952_v56, %v387_v62  ;;  %v580_v62 = vld [vmem:[%s1607_s8 + $0x70] sm:$0xff] }
 0x165   :  { %v407_v0 = vmax.f32 %v393_v61, 0.0 }
 0x166   :  { %v406_v1 = vmax.f32 %v388_v63, 0.0  ;;  %v1073_v2 = vpop.f32.mrb[6].mxu0  ;;  %v581_v63 = vld [vmem:[%s1607_s8 + $0x78] sm:$0xff] }
 0x167   :  { %v422_v3 = vrot.slane %v407_v0, 1  ;;  %v403_v4 = vadd.f32 %v1073_v2, %v952_v56  ;;  %v397_v5 = vpop.f32.mrb[7].mxu0 }
 0x168   :  { %v421_v6 = vrot.slane %v406_v1, 1  ;;  %v398_v7 = vadd.f32 %v952_v56, %v397_v5  ;;  %v579_v56 = vld [vmem:[%s1607_s8 + $0x68] sm:$0xff] }
 0x169   :  { %v409_v8 = vmax.f32 %v403_v4, 0.0  ;;  %v1221_v57 = vpack.c.bf16 %v579_v56, %v578_v55 }
 0x16a   :  { %v408_v9 = vmax.f32 %v398_v7, 0.0  ;;  %v423_v10 = vsel %vm268_vm1, %v421_v6, %v422_v3 }
 0x16b   :  { %v435_v11 = vrot.slane %v409_v8, 1  ;;  %424 = vrot.lane.b32.xlu0 %v423_v10, %s1306_s5  ;;  %1222 = vmatprep.subr.bf16.mxu1 %v1221_v57 }
 0x16c   :  { %v434_v12 = vrot.slane %v408_v9, 1  ;;  %1224 = vmatpush3.bf16.msra.mxu1 %v1221_v57 }
 0x16e   :  { %v436_v13 = vsel %vm268_vm1, %v434_v12, %v435_v11 }
 0x16f   :  { %439 = vrot.lane.b32.xlu1 %v436_v13, %s1306_s5  ;;  %437 = vrot.lane.b32.xlu0 %v434_v12, %s1306_s5 }
 0x173   :  { %426 = vrot.lane.b32.xlu1 %v422_v3, %s1306_s5  ;;  %441 = vrot.lane.b32.xlu0 %v435_v11, %s1306_s5 }
 0x1dd   :  { %v425_v14 = vpop.permute.xlu0 %424 }
 0x1de   :  { %v430_v15 = vsel %vm65_vm0, %v406_v1, %v425_v14  ;;  %v1225_v1 = vpack.c.bf16 %v581_v63, %v580_v62 }
 0x1df   :  { %1090 = vmatprep.mubr.msk.f32.mxu0 %vm466_vm8, %v430_v15 }
 0x1e0   :  { %1226 = vmatprep.subr.bf16.mxu1 %v1225_v1 }
 0x1e1   :  { %v440_v16 = vpop.permute.xlu1 %439  ;;  %v438_v17 = vpop.permute.xlu0 %437  ;;  %1228 = vmatpush3.bf16.msra.mxu1 %v1225_v1 }
 0x1e2   :  { %v447_v18 = vsel %vm65_vm0, %v408_v9, %v440_v16  ;;  %v446_v19 = vsel %vm65_vm0, %v407_v0, %v438_v17 }
 0x1e3   :  { %v453_v20 = vrot.slane %v447_v18, 1  ;;  %v452_v21 = vrot.slane %v446_v19, 1  ;;  %v722_v18 = vld [vmem:[%s1609_s10] sm:$0xff]  ;;  %v723_v19 = vld [vmem:[%s1609_s10 + $0x8] sm:$0xff] }
 0x1e5   :  { %v427_v22 = vpop.permute.xlu1 %426  ;;  %v454_v23 = vsel %vm268_vm1, %v452_v21, %v453_v20  ;;  %v442_v24 = vpop.permute.xlu0 %441 }
 0x1e6   :  { %v431_v25 = vsel %vm65_vm0, %v407_v0, %v427_v22  ;;  %v448_v26 = vsel %vm65_vm0, %v409_v8, %v442_v24  ;;  %v1552_v21 = vpop.f32.mrb[0].mxu1 }
 0x1e7   :  { %v459_v28 = vsel %vm458_vm9, %v431_v25, %v454_v23  ;;  %v455_v29 = vrot.slane %v448_v26, 1  ;;  %v1063_v22 = vpop.f32.mrb[1].mxu1 }
 0x1e8   :  { %1091 = vmatmul.mubr.msk.f32.vlgmr.msra.gmra.mrb[8].mxu0 %vm466_vm8, %v459_v28 }
 0x1e9   :  { %v456_v30 = vsel %vm268_vm1, %v453_v20, %v455_v29  ;;  %v1229_v20 = vpack.c.bf16 %v723_v19, %v722_v18 }
 0x1ea   :  { %1093 = vmatprep.mubr.msk.f32.mxu0 %vm466_vm8, %v456_v30 }
 0x1eb   :  { %1230 = vmatprep.subr.bf16.mxu0 %v1229_v20 }
 0x1ec   :  { %1094 = vmatmul.mubr.msk.f32.gmra.mrb[10].mxu0 %vm466_vm8, %v455_v29 }
 0x1ed   :  { %1232 = vmatpush3.bf16.msra.mxu0 %v1229_v20 }
 0x1ee   :  { %1234 = vmatprep.subr.bf16.mxu0 %v1233_v46 }
 0x1f1   :  { %1236 = vmatpush3.bf16.msra.mxu0 %v1233_v46 }
 0x1f2   :  { %1237 = vmatprep.subr.bf16.mxu0 %v1305_v27 }
 0x2bb   :  { %v1092_v58 = vpop.f32.mrb[8].mxu0 }
 0x2bc   :  { %v549_v59 = vadd.f32 %v1092_v58, %v958_v54  ;;  %v543_v60 = vpop.f32.mrb[9].mxu0 }
 0x2bd   :  { %v544_v61 = vadd.f32 %v958_v54, %v543_v60  ;;  %v964_v60 = vld [vmem:[%s1610_s11] ss:$0 sm:$0xff]  ;;  %s1310_s11 = smov [#allocation5]  }
 0x2be   :  { %v563_v0 = vmax.f32 %v549_v59, 0.0  ;;  %s932_s1 = sshll.u32 %s1310_s11, 4  ;;  %s933_s1 = int_to_ptr.vmem [resolvable:$true] %s932_s1 }
 0x2bf   :  { %v562_v2 = vmax.f32 %v544_v61, 0.0  ;;  %v1095_v3 = vpop.f32.mrb[10].mxu0  ;;  %s1276_s27 = scalar_lea.vmem %s933_s1, 32  ;;  %p1281_p6 = scmp.lt.s32.totalorder %s933_s1, %s933_s1 }
 0x2c0   :  { %v586_v4 = vrot.slane %v563_v0, 1  ;;  %v559_v5 = vadd.f32 %v1095_v3, %v958_v54  ;;  %v553_v6 = vpop.f32.mrb[11].mxu0  ;;  %p1277_p5 = scmp.ne.s32.totalorder %s933_s1, %s1276_s27  ;;  %p1282_p7 = scmp.lt.s32.totalorder %s1276_s27, %s1276_s27 }
 0x2c1   :  { %v585_v7 = vrot.slane %v562_v2, 1  ;;  %v554_v8 = vadd.f32 %v958_v54, %v553_v6 }
 0x2c2   :  { %v565_v9 = vmax.f32 %v559_v5, 0.0  ;;  %p1283_p8 = por %p1282_p7, %p1281_p6 }
 0x2c3   :  { %v564_v10 = vmax.f32 %v554_v8, 0.0  ;;  %v587_v11 = vsel %vm268_vm1, %v585_v7, %v586_v4  ;;  %v830_v7 = vstv %s941_s26 }
 0x2c4   :  { %v600_v12 = vrot.slane %v565_v9, 1  ;;  %v1259_v13 = vpack.i.bf16 %v586_v4, %v587_v11  ;;  %vm831_vm14 = vcmp.eq.s32.totalorder %v1493_v36, %v830_v7  ;;  %p1284_p9 = pnand %p1283_p8, %p1277_p5 }
 0x2c5   :  { %v598_v14 = vrot.slane %v564_v10, 1  ;;  %v969_v8 = vsel %vm831_vm14, 1.0, %v1308_v32 }
 0x2c6   :  { %1260 = vrot.lane.b32.xlu0 %v1259_v13, %s1309_s16 }
 0x2c7   :  { %v599_v15 = vsel %vm268_vm1, %v586_v4, %v598_v14  ;;  %v601_v16 = vsel %vm268_vm1, %v598_v14, %v600_v12 }
 0x2c8   :  { %v1254_v17 = vpack.i.bf16 %v601_v16, %v599_v15 }
 0x2ca   :  { %1255 = vrot.lane.b32.xlu1 %v1254_v17, %s1309_s16 }
 0x2ce   :  { %606 = vrot.lane.b32.xlu1 %v600_v12, %s1309_s16 }
 0x338   :  { %v1261_v23 = vpop.permute.xlu0 %1260 }
 0x339   :  { %v1262_v24 = vunpack.i.l.bf16 %v1261_v23  ;;  %v1263_v30 = vunpack.i.h.bf16 %v1261_v23 }
 0x33b   :  { %v594_v25 = vsel %vm466_vm8, %v562_v2, %v1262_v24  ;;  %v595_v39 = vsel %vm466_vm8, %v563_v0, %v1263_v30 }
 0x33c   :  { %v1256_v26 = vpop.permute.xlu1 %1255  ;;  %1128 = vmatprep.mubr.f32.mxu1 %v594_v25 }
 0x33d   :  { %v1258_v28 = vunpack.i.h.bf16 %v1256_v26  ;;  %v1257_v29 = vunpack.i.l.bf16 %v1256_v26 }
 0x33f   :  { %v612_v31 = vsel %vm466_vm8, %v564_v10, %v1258_v28  ;;  %v611_v33 = vsel %vm466_vm8, %v563_v0, %v1257_v29 }
 0x340   :  { %v618_v34 = vrot.slane %v612_v31, 1  ;;  %v617_v35 = vrot.slane %v611_v33, 1  ;;  %v607_v37 = vpop.permute.xlu1 %606 }
 0x341   :  { %v613_v38 = vsel %vm466_vm8, %v565_v9, %v607_v37 }
 0x342   :  { %v620_v40 = vrot.slane %v613_v38, 1  ;;  %v619_v41 = vsel %vm268_vm1, %v617_v35, %v618_v34 }
 0x343   :  { %v626_v42 = vsel %vm625_vm12, %v595_v39, %v619_v41 }
 0x344   :  { %1129 = vmatmul.mubr.f32.vlgmr.msra.gmra.mrb[2].mxu1 %v626_v42  ;;  %v621_v43 = vsel %vm268_vm1, %v618_v34, %v620_v40  ;;  %vm924_vm1 = vcmask 205824  }
 0x345   :  { %1131 = vmatprep.mubr.f32.mxu1 %v621_v43 }
 0x348   :  { %1132 = vmatmul.mubr.f32.gmra.mrb[4].mxu1 %v620_v40 }
 0x417   :  { %v1130_v48 = vpop.f32.mrb[2].mxu1 }
 0x418   :  { %v705_v49 = vadd.f32 %v1130_v48, %v963_v47  ;;  %v699_v50 = vpop.f32.mrb[3].mxu1 }
 0x419   :  { %v700_v51 = vadd.f32 %v963_v47, %v699_v50 }
 0x41a   :  { %v719_v54 = vmax.f32 %v705_v49, 0.0 }
 0x41b   :  { %v718_v52 = vmax.f32 %v700_v51, 0.0  ;;  %v1133_v53 = vpop.f32.mrb[4].mxu1 }
 0x41c   :  { %v715_v55 = vadd.f32 %v1133_v53, %v963_v47  ;;  %v709_v56 = vpop.f32.mrb[5].mxu1 }
 0x41d   :  { %v710_v57 = vadd.f32 %v963_v47, %v709_v56  ;;  %1142 = vmatprep.mubr.msk.f32.mxu0 %vm65_vm0, %v718_v52 }
 0x41e   :  { %1143 = vmatmul.mubr.msk.f32.vlgmr.msra.gmra.mrb[12].mxu0 %vm65_vm0, %v719_v54  ;;  %v721_v59 = vmax.f32 %v715_v55, 0.0 }
 0x41f   :  { %v720_v58 = vmax.f32 %v710_v57, 0.0 }
 0x421   :  { %1145 = vmatprep.mubr.msk.f32.mxu0 %vm65_vm0, %v720_v58 }
 0x422   :  { %1146 = vmatmul.mubr.msk.f32.gmra.mrb[14].mxu0 %vm65_vm0, %v721_v59 }
 0x423   :  { %1156 = vmatprep.mubr.msk.f32.mxu0 %vm1307_vm10, %v1308_v32 }
 0x4f1   :  { %v1144_v61 = vpop.f32.mrb[12].mxu0 }
 0x4f2   :  { %v817_v62 = vadd.f32 %v1144_v61, %v964_v60  ;;  %v811_v63 = vpop.f32.mrb[13].mxu0 }
 0x4f3   :  { %v812_v0 = vadd.f32 %v964_v60, %v811_v63 }
 0x4f5   :  { %v1238_v1 = vpack.c.bf16 %v817_v62, %v812_v0  ;;  %v1147_v2 = vpop.f32.mrb[14].mxu0 }
 0x4f6   :  { %v827_v3 = vadd.f32 %v1147_v2, %v964_v60  ;;  %v821_v4 = vpop.f32.mrb[15].mxu0 }
 0x4f7   :  { %v822_v5 = vadd.f32 %v964_v60, %v821_v4  ;;  %1240 = vmatpush3.bf16.xpose.msk.msra.mxu0 %vm1239_vm13, %v1238_v1 }
 0x4f8   :  { %1241 = vmatprep.subr.bf16.mxu0 %v1305_v27 }
 0x4f9   :  { %v1242_v6 = vpack.c.bf16 %v827_v3, %v822_v5 }
 0x4ff   :  { %1244 = vmatpush3.bf16.xpose.msk.msra.mxu0 %vm1239_vm13, %v1242_v6 }
 0x506   :  { %1157 = vmatmul.mubr.msk.f32.vlgmr.msra.gmra.mrb[16].mxu0 %vm65_vm0, %v969_v8 }
 0x5d9   :  { %v915_v9 = vpop.f32.mrb[16].mxu0 }
 0x5da   :  { %v920_v10 = vrot.slane %v915_v9, 7  ;;  %v1158_v11 = vpop.f32.mrb[17].mxu0 }
 0x5dc   :  { %v923_v12 = vsel %vm922_vm15, %v1552_v21, %v920_v10 }
 0x5dd   :  { %925 = vst.msk [vmem:[#allocation5] sm:$0x3] %vm924_vm1, %v923_v12 }
 0x5de   :  { %1287 = shalt.err (!%p1284_p9)
}
 0x5df   :  { %s1288_s5 = scalar_lea.hbm %s1611_s12, 32 }
 0x5e0   :  { %p1289_p10 = scmp.ne.s32.totalorder %s1611_s12, %s1288_s5  ;;  %p1292_p11 = scmp.lt.u32.totalorder %s1288_s5, %s1611_s12 }
 0x5e2   :  { %p1294_p12 = pnand %p1292_p11, %p1289_p10 }
 0x5e4   :  { %1297 = shalt.err (!%p1294_p12)
}
 0x5e5   :  { %935 = dma.vmem_to_hbm [thread:$0]  %s933_s1, 32, %s1611_s12, [#allocation3]  }
 0x5e6   :  { %1300 = dma.done.wait [#allocation3], 32  }
 0x5e7   :  { %1301 = vsyncadd [#allocation3], 4294967264 }
 0x5e8   :  { %939 = vsyncpa [#allocation3], 1 }
 0x5e9   :  { %940 = vsyncpa [#allocation4], 1 }

</bundles_post_ra>
